<compile_context>
chip_gen: v6e
topology: v6e:2x2x1
jax: 0.10.0
libtpu: 0.0.40
codegen_flags: <defaults>
</compile_context>

<pallas_src>
import functools
import math

import jax
import jax.numpy as jnp
from jax.experimental import pallas as pl
from jax.experimental.pallas import tpu as pltpu


def _round_up(n, m):
    return ((n + m - 1) // m) * m


def _build_spline_tables(params, num_bins, tail_bound,
                         min_bin_width, min_bin_height, min_derivative):
    """x-independent per-feature spline tables.

    params: (D, 3*num_bins - 1) -> dict of (num_bins, D) f32 arrays with the
    feature dim last so it maps onto the TPU lane (fast) axis in the kernel.
    """
    D = params.shape[0]
    K = num_bins
    left, right = -tail_bound, tail_bound
    bottom, top = -tail_bound, tail_bound

    uw = params[:, :K]
    uh = params[:, K:2 * K]
    ud = params[:, 2 * K:]                                 # (D, K-1)

    # Boundary derivatives fixed so that min_derivative + softplus(const) == 1.
    const = math.log(math.exp(1.0 - min_derivative) - 1.0)
    ud = jnp.concatenate(
        [jnp.full((D, 1), const, params.dtype), ud,
         jnp.full((D, 1), const, params.dtype)], axis=-1)  # (D, K+1)

    w = jax.nn.softmax(uw, axis=-1)
    w = min_bin_width + (1.0 - min_bin_width * K) * w
    cw = jnp.concatenate([jnp.zeros((D, 1), w.dtype), jnp.cumsum(w, axis=-1)], axis=-1)
    cw = (right - left) * cw + left
    cw = cw.at[:, 0].set(left)
    cw = cw.at[:, -1].set(right)
    w = cw[:, 1:] - cw[:, :-1]                             # (D, K)

    h = jax.nn.softmax(uh, axis=-1)
    h = min_bin_height + (1.0 - min_bin_height * K) * h
    ch = jnp.concatenate([jnp.zeros((D, 1), h.dtype), jnp.cumsum(h, axis=-1)], axis=-1)
    ch = (top - bottom) * ch + bottom
    ch = ch.at[:, 0].set(bottom)
    ch = ch.at[:, -1].set(top)
    h = ch[:, 1:] - ch[:, :-1]                             # (D, K)

    d = min_derivative + jax.nn.softplus(ud)               # (D, K+1)

    return dict(
        cw=cw[:, :K].T,     # left knot x of bin k        (K, D)
        w=w.T,              # bin width                   (K, D)
        ch=ch[:, :K].T,     # left knot y of bin k        (K, D)
        h=h.T,              # bin height                  (K, D)
        d=d[:, :K].T,       # derivative at left knot     (K, D)
        dp1=d[:, 1:].T,     # derivative at right knot    (K, D)
    )


# Padding values for unused lanes: a degenerate-but-valid single bin so the
# spline math stays finite (no 1/0, no log(0)) on padded columns.
_TABLE_PAD = dict(cw=0.0, w=1.0, ch=0.0, h=1.0, d=1.0, dp1=1.0)


def _rqs_fwd_kernel(x_ref, cw_ref, w_ref, ch_ref, h_ref, d_ref, dp1_ref,
                    y_ref, ld_ref, *, num_bins, tail_bound):
    K = num_bins
    x = x_ref[...].astype(jnp.float32)                     # (TB, D)
    inside = jnp.logical_and(x >= -tail_bound, x <= tail_bound)
    xc = jnp.clip(x, -tail_bound, tail_bound)

    cw = cw_ref[...]                                       # (K, D) tables
    w = w_ref[...]
    ch = ch_ref[...]
    h = h_ref[...]
    d = d_ref[...]
    dp1 = dp1_ref[...]

    # Fused bin-search + parameter select: knots are monotone, so promoting the
    # running parameters whenever xc crosses the next interior knot lands on
    # the correct bin.  No int32 bin index, no one-hot equality pass.
    p_cw, p_w, p_ch, p_h, p_d, p_dp1 = (
        cw[0:1, :], w[0:1, :], ch[0:1, :], h[0:1, :], d[0:1, :], dp1[0:1, :])
    for j in range(1, K):
        m = xc >= cw[j:j + 1, :]
        p_cw = jnp.where(m, cw[j:j + 1, :], p_cw)
        p_w = jnp.where(m, w[j:j + 1, :], p_w)
        p_ch = jnp.where(m, ch[j:j + 1, :], p_ch)
        p_h = jnp.where(m, h[j:j + 1, :], p_h)
        p_d = jnp.where(m, d[j:j + 1, :], p_d)
        p_dp1 = jnp.where(m, dp1[j:j + 1, :], p_dp1)

    # Rational-quadratic spline evaluation (forward).
    # delta = h/w is computed here instead of shipping a 7th table; the
    # reciprocal of w is reused for theta.
    inv_w = 1.0 / p_w
    p_delta = p_h * inv_w

    theta = (xc - p_cw) * inv_w
    one_m_theta = 1.0 - theta
    t_1mt = theta * one_m_theta
    theta2 = theta * theta

    numerator = p_h * (p_delta * theta2 + p_d * t_1mt)
    denominator = p_delta + (p_d + p_dp1 - 2.0 * p_delta) * t_1mt
    r = 1.0 / denominator                                   # exact divide (tolerance)
    y_spline = p_ch + numerator * r

    dnum = (p_delta * p_delta) * (
        p_dp1 * theta2 + 2.0 * p_delta * t_1mt + p_d * one_m_theta * one_m_theta)
    ld_spline = jnp.log(dnum * (r * r))        # == log(dnum) - 2*log(denominator)

    # Linear (identity) tails outside [-tail_bound, tail_bound].
    y_ref[...] = jnp.where(inside, y_spline, x).astype(y_ref.dtype)
    ld_ref[...] = jnp.where(inside, ld_spline, 0.0).astype(ld_ref.dtype)


def piecewise_rq_forward(x, params, *, num_bins=8, tail_bound=3.0,
                         min_bin_width=1e-3, min_bin_height=1e-3,
                         min_derivative=1e-3, io_dtype=None):
    """Forward pass of PiecewiseRationalQuadraticTransform.

    Args:
      x:        (B, D) float array.
      params:   (D, 3*num_bins - 1) float array (the module's nn.Parameter).
      io_dtype: optional reduced-precision dtype (e.g. jnp.bfloat16) for the
                HBM-resident kernel I/O; in-kernel compute stays f32.
    Returns:
      (y, logabsdet): both (B, D) — elementwise, no coupling across features.
    """
    B, D = x.shape
    K = num_bins
    x32 = x.astype(jnp.float32)
    params = params.astype(jnp.float32)
    io_dtype = jnp.float32 if io_dtype is None else io_dtype

    # x-independent tables computed once in plain JAX (softmax/cumsum/softplus).
    tables = _build_spline_tables(params, K, tail_bound,
                                  min_bin_width, min_bin_height, min_derivative)

    transformed = False   # True once x_work is a private copy (safe to alias/donate)

    # Lane packing: fold g batch rows into the 128-wide lane axis when D < 128
    # so every lane carries real data (D=32 -> 4 rows per 128 lanes).
    g = max(1, 128 // D) if D < 128 else 1
    if g > 1:
        B_rows = _round_up(B, g)
        x_work = jnp.pad(x32, ((0, B_rows - B), (0, 0))).reshape(B_rows // g, g * D)
        tables = {k: jnp.tile(v, (1, g)) for k, v in tables.items()}
        transformed = True
    else:
        x_work = x32
    B2, D2 = x_work.shape

    # Lane-dense feature axis: pad to a multiple of 128 (unmasked vst stores).
    D_pad = _round_up(D2, 128)
    if D_pad != D2:
        x_work = jnp.pad(x_work, ((0, 0), (0, D_pad - D2)))
        tables = {k: jnp.pad(v, ((0, 0), (0, D_pad - D2)),
                             constant_values=_TABLE_PAD[k])
                  for k, v in tables.items()}
        transformed = True

    # Batch tiling: ~1.5 MiB per stream buffer (amortizes the ~0.35us/step
    # pipeline overhead), rows a multiple of 8 sublanes; guarantee >= 2 grid
    # tiles whenever there is enough work so v7x's 2nd TensorCore is used.
    bytes_per_row = D_pad * 4
    TB = max(8, ((1536 * 1024) // bytes_per_row) // 8 * 8)
    B2_pad = _round_up(B2, 8)
    TB = min(TB, B2_pad)
    if TB >= B2_pad and B2_pad >= 16:
        TB = max(8, (B2_pad // 2) // 8 * 8)
    B_final = _round_up(B2_pad, TB)
    if B_final != B2:
        x_work = jnp.pad(x_work, ((0, B_final - B2), (0, 0)))
        transformed = True

    if x_work.dtype != io_dtype:
        x_work = x_work.astype(io_dtype)
        transformed = True
    itemsize = jnp.dtype(io_dtype).itemsize

    # 3 streams (x, y, ld) double-buffered + 6 tiny tables + slack; fits under
    # the v5e 16 MiB scoped default and well under v7x's 64 MiB physical VMEM.
    est_vmem = 6 * TB * D_pad * itemsize + 12 * K * D_pad * 4 + (2 << 20)
    vmem_limit = int(min(32 * 1024 * 1024, max(16 * 1024 * 1024, est_vmem)))

    kernel = functools.partial(_rqs_fwd_kernel, num_bins=K,
                               tail_bound=float(tail_bound))

    tile_spec = pl.BlockSpec((TB, D_pad), lambda i: (i, 0))
    table_spec = pl.BlockSpec((K, D_pad), lambda i: (0, 0))

    y_p, ld_p = pl.pallas_call(
        kernel,
        out_shape=(jax.ShapeDtypeStruct((B_final, D_pad), io_dtype),
                   jax.ShapeDtypeStruct((B_final, D_pad), io_dtype)),
        grid_spec=pltpu.PrefetchScalarGridSpec(
            num_scalar_prefetch=0,
            grid=(B_final // TB,),
            in_specs=[tile_spec] + [table_spec] * 6,
            out_specs=[tile_spec, tile_spec],
        ),
        # y has identical shape/dtype to the (private, padded) x_work copy, so
        # reuse its HBM buffer; never donate the caller's own array.
        input_output_aliases=({0: 0} if transformed else {}),
        compiler_params=pltpu.CompilerParams(
            dimension_semantics=("parallel",),     # v7x: shard batch tiles over 2 TCs
            vmem_limit_bytes=vmem_limit),
    )(x_work, tables["cw"], tables["w"], tables["ch"], tables["h"],
      tables["d"], tables["dp1"])

    def _unpack(a):
        a = a[:B2, :D2].astype(jnp.float32)
        if g > 1:
            a = a.reshape(B2 * g, D)
        return a[:B]

    return _unpack(y_p), _unpack(ld_p)


def _rqs_reference(x, params, num_bins, tail_bound,
                   min_bin_width, min_bin_height, min_derivative):
    """Pure-JAX mirror of azua's unconstrained_RQS forward (searchsorted + gather)."""
    B, D = x.shape
    K = num_bins
    left, right = -tail_bound, tail_bound
    bottom, top = -tail_bound, tail_bound

    uw = jnp.broadcast_to(params[None, :, :K], (B, D, K))
    uh = jnp.broadcast_to(params[None, :, K:2 * K], (B, D, K))
    ud = jnp.broadcast_to(params[None, :, 2 * K:], (B, D, K - 1))
    const = math.log(math.exp(1.0 - min_derivative) - 1.0)
    ud = jnp.concatenate([jnp.full((B, D, 1), const, x.dtype), ud,
                          jnp.full((B, D, 1), const, x.dtype)], axis=-1)

    inside = (x >= left) & (x <= right)

    widths = jax.nn.softmax(uw, axis=-1)
    widths = min_bin_width + (1 - min_bin_width * K) * widths
    cumwidths = jnp.pad(jnp.cumsum(widths, axis=-1), ((0, 0), (0, 0), (1, 0)))
    cumwidths = (right - left) * cumwidths + left
    cumwidths = cumwidths.at[..., 0].set(left).at[..., -1].set(right)
    widths = cumwidths[..., 1:] - cumwidths[..., :-1]

    derivatives = min_derivative + jax.nn.softplus(ud)

    heights = jax.nn.softmax(uh, axis=-1)
    heights = min_bin_height + (1 - min_bin_height * K) * heights
    cumheights = jnp.pad(jnp.cumsum(heights, axis=-1), ((0, 0), (0, 0), (1, 0)))
    cumheights = (top - bottom) * cumheights + bottom
    cumheights = cumheights.at[..., 0].set(bottom).at[..., -1].set(top)
    heights = cumheights[..., 1:] - cumheights[..., :-1]

    xc = jnp.clip(x, left, right)
    cw_search = cumwidths.at[..., -1].add(1e-6)
    bin_idx = jnp.sum((xc[..., None] >= cw_search).astype(jnp.int32), axis=-1) - 1
    bin_idx = jnp.clip(bin_idx, 0, K - 1)[..., None]

    def gat(t):
        return jnp.take_along_axis(t, bin_idx, axis=-1)[..., 0]

    in_cw = gat(cumwidths)
    in_w = gat(widths)
    in_ch = gat(cumheights)
    in_h = gat(heights)
    in_delta = gat(heights / widths)
    in_d = gat(derivatives)
    in_dp1 = gat(derivatives[..., 1:])

    theta = (xc - in_cw) / in_w
    t_1mt = theta * (1 - theta)
    numerator = in_h * (in_delta * theta ** 2 + in_d * t_1mt)
    denominator = in_delta + (in_d + in_dp1 - 2 * in_delta) * t_1mt
    outputs = in_ch + numerator / denominator
    dnum = in_delta ** 2 * (in_dp1 * theta ** 2 + 2 * in_delta * t_1mt
                            + in_d * (1 - theta) ** 2)
    logabsdet = jnp.log(dnum) - 2 * jnp.log(denominator)

    return jnp.where(inside, outputs, x), jnp.where(inside, logabsdet, 0.0)


if __name__ == "__main__":
    # Shapes consistent with the module: forward takes (batch_size, input_dim);
    # params are (dim, 3*num_bins - 1), num_bins=8, tail_bound=3.0, init_scale=0.01.
    B, D, K = 2, 32, 8
    tail_bound = 3.0
    init_scale = 0.01

    key = jax.random.PRNGKey(0)
    kx, kp = jax.random.split(key)
    # Scale 2.0 so some elements fall outside [-tail_bound, tail_bound] and
    # exercise the identity-tail branch.
    x = 2.0 * jax.random.normal(kx, (B, D), dtype=jnp.float32)
    params = init_scale * jax.random.normal(kp, (D, 3 * K - 1), dtype=jnp.float32)

    y, logdet = piecewise_rq_forward(x, params, num_bins=K, tail_bound=tail_bound)
    jax.block_until_ready((y, logdet))

    y_ref, logdet_ref = _rqs_reference(x, params, K, tail_bound, 1e-3, 1e-3, 1e-3)
    assert y.shape == (B, D) and logdet.shape == (B, D)
    assert jnp.allclose(y, y_ref, atol=1e-5, rtol=1e-5), \
        float(jnp.max(jnp.abs(y - y_ref)))
    assert jnp.allclose(logdet, logdet_ref, atol=1e-5, rtol=1e-5), \
        float(jnp.max(jnp.abs(logdet - logdet_ref)))

    print("KERNEL_OK")
</pallas_src>

<mosaic_0001>
module attributes {stable_mosaic.version = 11 : i64} {
  func.func @_rqs_fwd_kernel(%arg0: i32, %arg1: memref<8x128xf32, #tpu.memory_space<vmem>>, %arg2: memref<8x128xf32, #tpu.memory_space<vmem>>, %arg3: memref<8x128xf32, #tpu.memory_space<vmem>>, %arg4: memref<8x128xf32, #tpu.memory_space<vmem>>, %arg5: memref<8x128xf32, #tpu.memory_space<vmem>>, %arg6: memref<8x128xf32, #tpu.memory_space<vmem>>, %arg7: memref<8x128xf32, #tpu.memory_space<vmem>>, %arg8: memref<8x128xf32, #tpu.memory_space<vmem>>, %arg9: memref<8x128xf32, #tpu.memory_space<vmem>>) attributes {dimension_semantics = [#tpu.dimension_semantics<parallel>], iteration_bounds = array<i64: 1>, scalar_prefetch = 0 : i64, scratch_operands = 0 : i64, tpu.core_type = #tpu.core_type<tc>, window_params = [{transform_indices = @transform_0, window_bounds = array<i64: 8, 128>}, {pipeline_mode = #tpu.pipeline_mode<synchronous>, transform_indices = @transform_1, window_bounds = array<i64: 8, 128>}, {pipeline_mode = #tpu.pipeline_mode<synchronous>, transform_indices = @transform_2, window_bounds = array<i64: 8, 128>}, {pipeline_mode = #tpu.pipeline_mode<synchronous>, transform_indices = @transform_3, window_bounds = array<i64: 8, 128>}, {pipeline_mode = #tpu.pipeline_mode<synchronous>, transform_indices = @transform_4, window_bounds = array<i64: 8, 128>}, {pipeline_mode = #tpu.pipeline_mode<synchronous>, transform_indices = @transform_5, window_bounds = array<i64: 8, 128>}, {pipeline_mode = #tpu.pipeline_mode<synchronous>, transform_indices = @transform_6, window_bounds = array<i64: 8, 128>}, {transform_indices = @transform_7, window_bounds = array<i64: 8, 128>}, {transform_indices = @transform_8, window_bounds = array<i64: 8, 128>}]} {
    %c0 = arith.constant 0 : index
    %c0_0 = arith.constant 0 : index
    %0 = vector.load %arg1[%c0, %c0_0] : memref<8x128xf32, #tpu.memory_space<vmem>>, vector<8x128xf32>
    %cst = arith.constant -3.000000e+00 : f32
    %1 = vector.broadcast %cst : f32 to vector<8x128xf32>
    %2 = arith.cmpf oge, %0, %1 : vector<8x128xf32>
    %cst_1 = arith.constant 3.000000e+00 : f32
    %3 = vector.broadcast %cst_1 : f32 to vector<8x128xf32>
    %4 = arith.cmpf ole, %0, %3 : vector<8x128xf32>
    %5 = arith.andi %2, %4 : vector<8x128xi1>
    %cst_2 = arith.constant -3.000000e+00 : f32
    %cst_3 = arith.constant 3.000000e+00 : f32
    %6 = vector.broadcast %cst_2 : f32 to vector<8x128xf32>
    %7 = arith.maximumf %6, %0 : vector<8x128xf32>
    %8 = vector.broadcast %cst_3 : f32 to vector<8x128xf32>
    %9 = arith.minimumf %8, %7 : vector<8x128xf32>
    %c0_4 = arith.constant 0 : index
    %c0_5 = arith.constant 0 : index
    %10 = vector.load %arg2[%c0_4, %c0_5] : memref<8x128xf32, #tpu.memory_space<vmem>>, vector<8x128xf32>
    %c0_6 = arith.constant 0 : index
    %c0_7 = arith.constant 0 : index
    %11 = vector.load %arg3[%c0_6, %c0_7] : memref<8x128xf32, #tpu.memory_space<vmem>>, vector<8x128xf32>
    %c0_8 = arith.constant 0 : index
    %c0_9 = arith.constant 0 : index
    %12 = vector.load %arg4[%c0_8, %c0_9] : memref<8x128xf32, #tpu.memory_space<vmem>>, vector<8x128xf32>
    %c0_10 = arith.constant 0 : index
    %c0_11 = arith.constant 0 : index
    %13 = vector.load %arg5[%c0_10, %c0_11] : memref<8x128xf32, #tpu.memory_space<vmem>>, vector<8x128xf32>
    %c0_12 = arith.constant 0 : index
    %c0_13 = arith.constant 0 : index
    %14 = vector.load %arg6[%c0_12, %c0_13] : memref<8x128xf32, #tpu.memory_space<vmem>>, vector<8x128xf32>
    %c0_14 = arith.constant 0 : index
    %c0_15 = arith.constant 0 : index
    %15 = vector.load %arg7[%c0_14, %c0_15] : memref<8x128xf32, #tpu.memory_space<vmem>>, vector<8x128xf32>
    %16 = vector.extract_strided_slice %10 {offsets = [0, 0], sizes = [1, 128], strides = [1, 1]} : vector<8x128xf32> to vector<1x128xf32>
    %17 = vector.extract_strided_slice %11 {offsets = [0, 0], sizes = [1, 128], strides = [1, 1]} : vector<8x128xf32> to vector<1x128xf32>
    %18 = vector.extract_strided_slice %12 {offsets = [0, 0], sizes = [1, 128], strides = [1, 1]} : vector<8x128xf32> to vector<1x128xf32>
    %19 = vector.extract_strided_slice %13 {offsets = [0, 0], sizes = [1, 128], strides = [1, 1]} : vector<8x128xf32> to vector<1x128xf32>
    %20 = vector.extract_strided_slice %14 {offsets = [0, 0], sizes = [1, 128], strides = [1, 1]} : vector<8x128xf32> to vector<1x128xf32>
    %21 = vector.extract_strided_slice %15 {offsets = [0, 0], sizes = [1, 128], strides = [1, 1]} : vector<8x128xf32> to vector<1x128xf32>
    %22 = vector.extract_strided_slice %10 {offsets = [1, 0], sizes = [1, 128], strides = [1, 1]} : vector<8x128xf32> to vector<1x128xf32>
    %23 = vector.broadcast %22 : vector<1x128xf32> to vector<8x128xf32>
    %24 = arith.cmpf oge, %9, %23 : vector<8x128xf32>
    %25 = vector.extract_strided_slice %10 {offsets = [1, 0], sizes = [1, 128], strides = [1, 1]} : vector<8x128xf32> to vector<1x128xf32>
    %26 = vector.shape_cast %25 : vector<1x128xf32> to vector<1x128xf32>
    %27 = vector.broadcast %26 : vector<1x128xf32> to vector<8x128xf32>
    %28 = vector.shape_cast %16 : vector<1x128xf32> to vector<1x128xf32>
    %29 = vector.broadcast %28 : vector<1x128xf32> to vector<8x128xf32>
    %30 = arith.select %24, %27, %29 : vector<8x128xi1>, vector<8x128xf32>
    %31 = vector.extract_strided_slice %11 {offsets = [1, 0], sizes = [1, 128], strides = [1, 1]} : vector<8x128xf32> to vector<1x128xf32>
    %32 = vector.shape_cast %31 : vector<1x128xf32> to vector<1x128xf32>
    %33 = vector.broadcast %32 : vector<1x128xf32> to vector<8x128xf32>
    %34 = vector.shape_cast %17 : vector<1x128xf32> to vector<1x128xf32>
    %35 = vector.broadcast %34 : vector<1x128xf32> to vector<8x128xf32>
    %36 = arith.select %24, %33, %35 : vector<8x128xi1>, vector<8x128xf32>
    %37 = vector.extract_strided_slice %12 {offsets = [1, 0], sizes = [1, 128], strides = [1, 1]} : vector<8x128xf32> to vector<1x128xf32>
    %38 = vector.shape_cast %37 : vector<1x128xf32> to vector<1x128xf32>
    %39 = vector.broadcast %38 : vector<1x128xf32> to vector<8x128xf32>
    %40 = vector.shape_cast %18 : vector<1x128xf32> to vector<1x128xf32>
    %41 = vector.broadcast %40 : vector<1x128xf32> to vector<8x128xf32>
    %42 = arith.select %24, %39, %41 : vector<8x128xi1>, vector<8x128xf32>
    %43 = vector.extract_strided_slice %13 {offsets = [1, 0], sizes = [1, 128], strides = [1, 1]} : vector<8x128xf32> to vector<1x128xf32>
    %44 = vector.shape_cast %43 : vector<1x128xf32> to vector<1x128xf32>
    %45 = vector.broadcast %44 : vector<1x128xf32> to vector<8x128xf32>
    %46 = vector.shape_cast %19 : vector<1x128xf32> to vector<1x128xf32>
    %47 = vector.broadcast %46 : vector<1x128xf32> to vector<8x128xf32>
    %48 = arith.select %24, %45, %47 : vector<8x128xi1>, vector<8x128xf32>
    %49 = vector.extract_strided_slice %14 {offsets = [1, 0], sizes = [1, 128], strides = [1, 1]} : vector<8x128xf32> to vector<1x128xf32>
    %50 = vector.shape_cast %49 : vector<1x128xf32> to vector<1x128xf32>
    %51 = vector.broadcast %50 : vector<1x128xf32> to vector<8x128xf32>
    %52 = vector.shape_cast %20 : vector<1x128xf32> to vector<1x128xf32>
    %53 = vector.broadcast %52 : vector<1x128xf32> to vector<8x128xf32>
    %54 = arith.select %24, %51, %53 : vector<8x128xi1>, vector<8x128xf32>
    %55 = vector.extract_strided_slice %15 {offsets = [1, 0], sizes = [1, 128], strides = [1, 1]} : vector<8x128xf32> to vector<1x128xf32>
    %56 = vector.shape_cast %55 : vector<1x128xf32> to vector<1x128xf32>
    %57 = vector.broadcast %56 : vector<1x128xf32> to vector<8x128xf32>
    %58 = vector.shape_cast %21 : vector<1x128xf32> to vector<1x128xf32>
    %59 = vector.broadcast %58 : vector<1x128xf32> to vector<8x128xf32>
    %60 = arith.select %24, %57, %59 : vector<8x128xi1>, vector<8x128xf32>
    %61 = vector.extract_strided_slice %10 {offsets = [2, 0], sizes = [1, 128], strides = [1, 1]} : vector<8x128xf32> to vector<1x128xf32>
    %62 = vector.broadcast %61 : vector<1x128xf32> to vector<8x128xf32>
    %63 = arith.cmpf oge, %9, %62 : vector<8x128xf32>
    %64 = vector.extract_strided_slice %10 {offsets = [2, 0], sizes = [1, 128], strides = [1, 1]} : vector<8x128xf32> to vector<1x128xf32>
    %65 = vector.shape_cast %64 : vector<1x128xf32> to vector<1x128xf32>
    %66 = vector.broadcast %65 : vector<1x128xf32> to vector<8x128xf32>
    %67 = arith.select %63, %66, %30 : vector<8x128xi1>, vector<8x128xf32>
    %68 = vector.extract_strided_slice %11 {offsets = [2, 0], sizes = [1, 128], strides = [1, 1]} : vector<8x128xf32> to vector<1x128xf32>
    %69 = vector.shape_cast %68 : vector<1x128xf32> to vector<1x128xf32>
    %70 = vector.broadcast %69 : vector<1x128xf32> to vector<8x128xf32>
    %71 = arith.select %63, %70, %36 : vector<8x128xi1>, vector<8x128xf32>
    %72 = vector.extract_strided_slice %12 {offsets = [2, 0], sizes = [1, 128], strides = [1, 1]} : vector<8x128xf32> to vector<1x128xf32>
    %73 = vector.shape_cast %72 : vector<1x128xf32> to vector<1x128xf32>
    %74 = vector.broadcast %73 : vector<1x128xf32> to vector<8x128xf32>
    %75 = arith.select %63, %74, %42 : vector<8x128xi1>, vector<8x128xf32>
    %76 = vector.extract_strided_slice %13 {offsets = [2, 0], sizes = [1, 128], strides = [1, 1]} : vector<8x128xf32> to vector<1x128xf32>
    %77 = vector.shape_cast %76 : vector<1x128xf32> to vector<1x128xf32>
    %78 = vector.broadcast %77 : vector<1x128xf32> to vector<8x128xf32>
    %79 = arith.select %63, %78, %48 : vector<8x128xi1>, vector<8x128xf32>
    %80 = vector.extract_strided_slice %14 {offsets = [2, 0], sizes = [1, 128], strides = [1, 1]} : vector<8x128xf32> to vector<1x128xf32>
    %81 = vector.shape_cast %80 : vector<1x128xf32> to vector<1x128xf32>
    %82 = vector.broadcast %81 : vector<1x128xf32> to vector<8x128xf32>
    %83 = arith.select %63, %82, %54 : vector<8x128xi1>, vector<8x128xf32>
    %84 = vector.extract_strided_slice %15 {offsets = [2, 0], sizes = [1, 128], strides = [1, 1]} : vector<8x128xf32> to vector<1x128xf32>
    %85 = vector.shape_cast %84 : vector<1x128xf32> to vector<1x128xf32>
    %86 = vector.broadcast %85 : vector<1x128xf32> to vector<8x128xf32>
    %87 = arith.select %63, %86, %60 : vector<8x128xi1>, vector<8x128xf32>
    %88 = vector.extract_strided_slice %10 {offsets = [3, 0], sizes = [1, 128], strides = [1, 1]} : vector<8x128xf32> to vector<1x128xf32>
    %89 = vector.broadcast %88 : vector<1x128xf32> to vector<8x128xf32>
    %90 = arith.cmpf oge, %9, %89 : vector<8x128xf32>
    %91 = vector.extract_strided_slice %10 {offsets = [3, 0], sizes = [1, 128], strides = [1, 1]} : vector<8x128xf32> to vector<1x128xf32>
    %92 = vector.shape_cast %91 : vector<1x128xf32> to vector<1x128xf32>
    %93 = vector.broadcast %92 : vector<1x128xf32> to vector<8x128xf32>
    %94 = arith.select %90, %93, %67 : vector<8x128xi1>, vector<8x128xf32>
    %95 = vector.extract_strided_slice %11 {offsets = [3, 0], sizes = [1, 128], strides = [1, 1]} : vector<8x128xf32> to vector<1x128xf32>
    %96 = vector.shape_cast %95 : vector<1x128xf32> to vector<1x128xf32>
    %97 = vector.broadcast %96 : vector<1x128xf32> to vector<8x128xf32>
    %98 = arith.select %90, %97, %71 : vector<8x128xi1>, vector<8x128xf32>
    %99 = vector.extract_strided_slice %12 {offsets = [3, 0], sizes = [1, 128], strides = [1, 1]} : vector<8x128xf32> to vector<1x128xf32>
    %100 = vector.shape_cast %99 : vector<1x128xf32> to vector<1x128xf32>
    %101 = vector.broadcast %100 : vector<1x128xf32> to vector<8x128xf32>
    %102 = arith.select %90, %101, %75 : vector<8x128xi1>, vector<8x128xf32>
    %103 = vector.extract_strided_slice %13 {offsets = [3, 0], sizes = [1, 128], strides = [1, 1]} : vector<8x128xf32> to vector<1x128xf32>
    %104 = vector.shape_cast %103 : vector<1x128xf32> to vector<1x128xf32>
    %105 = vector.broadcast %104 : vector<1x128xf32> to vector<8x128xf32>
    %106 = arith.select %90, %105, %79 : vector<8x128xi1>, vector<8x128xf32>
    %107 = vector.extract_strided_slice %14 {offsets = [3, 0], sizes = [1, 128], strides = [1, 1]} : vector<8x128xf32> to vector<1x128xf32>
    %108 = vector.shape_cast %107 : vector<1x128xf32> to vector<1x128xf32>
    %109 = vector.broadcast %108 : vector<1x128xf32> to vector<8x128xf32>
    %110 = arith.select %90, %109, %83 : vector<8x128xi1>, vector<8x128xf32>
    %111 = vector.extract_strided_slice %15 {offsets = [3, 0], sizes = [1, 128], strides = [1, 1]} : vector<8x128xf32> to vector<1x128xf32>
    %112 = vector.shape_cast %111 : vector<1x128xf32> to vector<1x128xf32>
    %113 = vector.broadcast %112 : vector<1x128xf32> to vector<8x128xf32>
    %114 = arith.select %90, %113, %87 : vector<8x128xi1>, vector<8x128xf32>
    %115 = vector.extract_strided_slice %10 {offsets = [4, 0], sizes = [1, 128], strides = [1, 1]} : vector<8x128xf32> to vector<1x128xf32>
    %116 = vector.broadcast %115 : vector<1x128xf32> to vector<8x128xf32>
    %117 = arith.cmpf oge, %9, %116 : vector<8x128xf32>
    %118 = vector.extract_strided_slice %10 {offsets = [4, 0], sizes = [1, 128], strides = [1, 1]} : vector<8x128xf32> to vector<1x128xf32>
    %119 = vector.shape_cast %118 : vector<1x128xf32> to vector<1x128xf32>
    %120 = vector.broadcast %119 : vector<1x128xf32> to vector<8x128xf32>
    %121 = arith.select %117, %120, %94 : vector<8x128xi1>, vector<8x128xf32>
    %122 = vector.extract_strided_slice %11 {offsets = [4, 0], sizes = [1, 128], strides = [1, 1]} : vector<8x128xf32> to vector<1x128xf32>
    %123 = vector.shape_cast %122 : vector<1x128xf32> to vector<1x128xf32>
    %124 = vector.broadcast %123 : vector<1x128xf32> to vector<8x128xf32>
    %125 = arith.select %117, %124, %98 : vector<8x128xi1>, vector<8x128xf32>
    %126 = vector.extract_strided_slice %12 {offsets = [4, 0], sizes = [1, 128], strides = [1, 1]} : vector<8x128xf32> to vector<1x128xf32>
    %127 = vector.shape_cast %126 : vector<1x128xf32> to vector<1x128xf32>
    %128 = vector.broadcast %127 : vector<1x128xf32> to vector<8x128xf32>
    %129 = arith.select %117, %128, %102 : vector<8x128xi1>, vector<8x128xf32>
    %130 = vector.extract_strided_slice %13 {offsets = [4, 0], sizes = [1, 128], strides = [1, 1]} : vector<8x128xf32> to vector<1x128xf32>
    %131 = vector.shape_cast %130 : vector<1x128xf32> to vector<1x128xf32>
    %132 = vector.broadcast %131 : vector<1x128xf32> to vector<8x128xf32>
    %133 = arith.select %117, %132, %106 : vector<8x128xi1>, vector<8x128xf32>
    %134 = vector.extract_strided_slice %14 {offsets = [4, 0], sizes = [1, 128], strides = [1, 1]} : vector<8x128xf32> to vector<1x128xf32>
    %135 = vector.shape_cast %134 : vector<1x128xf32> to vector<1x128xf32>
    %136 = vector.broadcast %135 : vector<1x128xf32> to vector<8x128xf32>
    %137 = arith.select %117, %136, %110 : vector<8x128xi1>, vector<8x128xf32>
    %138 = vector.extract_strided_slice %15 {offsets = [4, 0], sizes = [1, 128], strides = [1, 1]} : vector<8x128xf32> to vector<1x128xf32>
    %139 = vector.shape_cast %138 : vector<1x128xf32> to vector<1x128xf32>
    %140 = vector.broadcast %139 : vector<1x128xf32> to vector<8x128xf32>
    %141 = arith.select %117, %140, %114 : vector<8x128xi1>, vector<8x128xf32>
    %142 = vector.extract_strided_slice %10 {offsets = [5, 0], sizes = [1, 128], strides = [1, 1]} : vector<8x128xf32> to vector<1x128xf32>
    %143 = vector.broadcast %142 : vector<1x128xf32> to vector<8x128xf32>
    %144 = arith.cmpf oge, %9, %143 : vector<8x128xf32>
    %145 = vector.extract_strided_slice %10 {offsets = [5, 0], sizes = [1, 128], strides = [1, 1]} : vector<8x128xf32> to vector<1x128xf32>
    %146 = vector.shape_cast %145 : vector<1x128xf32> to vector<1x128xf32>
    %147 = vector.broadcast %146 : vector<1x128xf32> to vector<8x128xf32>
    %148 = arith.select %144, %147, %121 : vector<8x128xi1>, vector<8x128xf32>
    %149 = vector.extract_strided_slice %11 {offsets = [5, 0], sizes = [1, 128], strides = [1, 1]} : vector<8x128xf32> to vector<1x128xf32>
    %150 = vector.shape_cast %149 : vector<1x128xf32> to vector<1x128xf32>
    %151 = vector.broadcast %150 : vector<1x128xf32> to vector<8x128xf32>
    %152 = arith.select %144, %151, %125 : vector<8x128xi1>, vector<8x128xf32>
    %153 = vector.extract_strided_slice %12 {offsets = [5, 0], sizes = [1, 128], strides = [1, 1]} : vector<8x128xf32> to vector<1x128xf32>
    %154 = vector.shape_cast %153 : vector<1x128xf32> to vector<1x128xf32>
    %155 = vector.broadcast %154 : vector<1x128xf32> to vector<8x128xf32>
    %156 = arith.select %144, %155, %129 : vector<8x128xi1>, vector<8x128xf32>
    %157 = vector.extract_strided_slice %13 {offsets = [5, 0], sizes = [1, 128], strides = [1, 1]} : vector<8x128xf32> to vector<1x128xf32>
    %158 = vector.shape_cast %157 : vector<1x128xf32> to vector<1x128xf32>
    %159 = vector.broadcast %158 : vector<1x128xf32> to vector<8x128xf32>
    %160 = arith.select %144, %159, %133 : vector<8x128xi1>, vector<8x128xf32>
    %161 = vector.extract_strided_slice %14 {offsets = [5, 0], sizes = [1, 128], strides = [1, 1]} : vector<8x128xf32> to vector<1x128xf32>
    %162 = vector.shape_cast %161 : vector<1x128xf32> to vector<1x128xf32>
    %163 = vector.broadcast %162 : vector<1x128xf32> to vector<8x128xf32>
    %164 = arith.select %144, %163, %137 : vector<8x128xi1>, vector<8x128xf32>
    %165 = vector.extract_strided_slice %15 {offsets = [5, 0], sizes = [1, 128], strides = [1, 1]} : vector<8x128xf32> to vector<1x128xf32>
    %166 = vector.shape_cast %165 : vector<1x128xf32> to vector<1x128xf32>
    %167 = vector.broadcast %166 : vector<1x128xf32> to vector<8x128xf32>
    %168 = arith.select %144, %167, %141 : vector<8x128xi1>, vector<8x128xf32>
    %169 = vector.extract_strided_slice %10 {offsets = [6, 0], sizes = [1, 128], strides = [1, 1]} : vector<8x128xf32> to vector<1x128xf32>
    %170 = vector.broadcast %169 : vector<1x128xf32> to vector<8x128xf32>
    %171 = arith.cmpf oge, %9, %170 : vector<8x128xf32>
    %172 = vector.extract_strided_slice %10 {offsets = [6, 0], sizes = [1, 128], strides = [1, 1]} : vector<8x128xf32> to vector<1x128xf32>
    %173 = vector.shape_cast %172 : vector<1x128xf32> to vector<1x128xf32>
    %174 = vector.broadcast %173 : vector<1x128xf32> to vector<8x128xf32>
    %175 = arith.select %171, %174, %148 : vector<8x128xi1>, vector<8x128xf32>
    %176 = vector.extract_strided_slice %11 {offsets = [6, 0], sizes = [1, 128], strides = [1, 1]} : vector<8x128xf32> to vector<1x128xf32>
    %177 = vector.shape_cast %176 : vector<1x128xf32> to vector<1x128xf32>
    %178 = vector.broadcast %177 : vector<1x128xf32> to vector<8x128xf32>
    %179 = arith.select %171, %178, %152 : vector<8x128xi1>, vector<8x128xf32>
    %180 = vector.extract_strided_slice %12 {offsets = [6, 0], sizes = [1, 128], strides = [1, 1]} : vector<8x128xf32> to vector<1x128xf32>
    %181 = vector.shape_cast %180 : vector<1x128xf32> to vector<1x128xf32>
    %182 = vector.broadcast %181 : vector<1x128xf32> to vector<8x128xf32>
    %183 = arith.select %171, %182, %156 : vector<8x128xi1>, vector<8x128xf32>
    %184 = vector.extract_strided_slice %13 {offsets = [6, 0], sizes = [1, 128], strides = [1, 1]} : vector<8x128xf32> to vector<1x128xf32>
    %185 = vector.shape_cast %184 : vector<1x128xf32> to vector<1x128xf32>
    %186 = vector.broadcast %185 : vector<1x128xf32> to vector<8x128xf32>
    %187 = arith.select %171, %186, %160 : vector<8x128xi1>, vector<8x128xf32>
    %188 = vector.extract_strided_slice %14 {offsets = [6, 0], sizes = [1, 128], strides = [1, 1]} : vector<8x128xf32> to vector<1x128xf32>
    %189 = vector.shape_cast %188 : vector<1x128xf32> to vector<1x128xf32>
    %190 = vector.broadcast %189 : vector<1x128xf32> to vector<8x128xf32>
    %191 = arith.select %171, %190, %164 : vector<8x128xi1>, vector<8x128xf32>
    %192 = vector.extract_strided_slice %15 {offsets = [6, 0], sizes = [1, 128], strides = [1, 1]} : vector<8x128xf32> to vector<1x128xf32>
    %193 = vector.shape_cast %192 : vector<1x128xf32> to vector<1x128xf32>
    %194 = vector.broadcast %193 : vector<1x128xf32> to vector<8x128xf32>
    %195 = arith.select %171, %194, %168 : vector<8x128xi1>, vector<8x128xf32>
    %196 = vector.extract_strided_slice %10 {offsets = [7, 0], sizes = [1, 128], strides = [1, 1]} : vector<8x128xf32> to vector<1x128xf32>
    %197 = vector.broadcast %196 : vector<1x128xf32> to vector<8x128xf32>
    %198 = arith.cmpf oge, %9, %197 : vector<8x128xf32>
    %199 = vector.extract_strided_slice %10 {offsets = [7, 0], sizes = [1, 128], strides = [1, 1]} : vector<8x128xf32> to vector<1x128xf32>
    %200 = vector.shape_cast %199 : vector<1x128xf32> to vector<1x128xf32>
    %201 = vector.broadcast %200 : vector<1x128xf32> to vector<8x128xf32>
    %202 = arith.select %198, %201, %175 : vector<8x128xi1>, vector<8x128xf32>
    %203 = vector.extract_strided_slice %11 {offsets = [7, 0], sizes = [1, 128], strides = [1, 1]} : vector<8x128xf32> to vector<1x128xf32>
    %204 = vector.shape_cast %203 : vector<1x128xf32> to vector<1x128xf32>
    %205 = vector.broadcast %204 : vector<1x128xf32> to vector<8x128xf32>
    %206 = arith.select %198, %205, %179 : vector<8x128xi1>, vector<8x128xf32>
    %207 = vector.extract_strided_slice %12 {offsets = [7, 0], sizes = [1, 128], strides = [1, 1]} : vector<8x128xf32> to vector<1x128xf32>
    %208 = vector.shape_cast %207 : vector<1x128xf32> to vector<1x128xf32>
    %209 = vector.broadcast %208 : vector<1x128xf32> to vector<8x128xf32>
    %210 = arith.select %198, %209, %183 : vector<8x128xi1>, vector<8x128xf32>
    %211 = vector.extract_strided_slice %13 {offsets = [7, 0], sizes = [1, 128], strides = [1, 1]} : vector<8x128xf32> to vector<1x128xf32>
    %212 = vector.shape_cast %211 : vector<1x128xf32> to vector<1x128xf32>
    %213 = vector.broadcast %212 : vector<1x128xf32> to vector<8x128xf32>
    %214 = arith.select %198, %213, %187 : vector<8x128xi1>, vector<8x128xf32>
    %215 = vector.extract_strided_slice %14 {offsets = [7, 0], sizes = [1, 128], strides = [1, 1]} : vector<8x128xf32> to vector<1x128xf32>
    %216 = vector.shape_cast %215 : vector<1x128xf32> to vector<1x128xf32>
    %217 = vector.broadcast %216 : vector<1x128xf32> to vector<8x128xf32>
    %218 = arith.select %198, %217, %191 : vector<8x128xi1>, vector<8x128xf32>
    %219 = vector.extract_strided_slice %15 {offsets = [7, 0], sizes = [1, 128], strides = [1, 1]} : vector<8x128xf32> to vector<1x128xf32>
    %220 = vector.shape_cast %219 : vector<1x128xf32> to vector<1x128xf32>
    %221 = vector.broadcast %220 : vector<1x128xf32> to vector<8x128xf32>
    %222 = arith.select %198, %221, %195 : vector<8x128xi1>, vector<8x128xf32>
    %cst_16 = arith.constant 1.000000e+00 : f32
    %223 = vector.broadcast %cst_16 : f32 to vector<8x128xf32>
    %224 = arith.divf %223, %206 : vector<8x128xf32>
    %225 = arith.mulf %214, %224 : vector<8x128xf32>
    %226 = arith.subf %9, %202 : vector<8x128xf32>
    %227 = arith.mulf %226, %224 : vector<8x128xf32>
    %cst_17 = arith.constant 1.000000e+00 : f32
    %228 = vector.broadcast %cst_17 : f32 to vector<8x128xf32>
    %229 = arith.subf %228, %227 : vector<8x128xf32>
    %230 = arith.mulf %227, %229 : vector<8x128xf32>
    %231 = arith.mulf %227, %227 : vector<8x128xf32>
    %232 = arith.mulf %225, %231 : vector<8x128xf32>
    %233 = arith.mulf %218, %230 : vector<8x128xf32>
    %234 = arith.addf %232, %233 : vector<8x128xf32>
    %235 = arith.mulf %214, %234 : vector<8x128xf32>
    %236 = arith.addf %218, %222 : vector<8x128xf32>
    %cst_18 = arith.constant 2.000000e+00 : f32
    %237 = vector.broadcast %cst_18 : f32 to vector<8x128xf32>
    %238 = arith.mulf %237, %225 : vector<8x128xf32>
    %239 = arith.subf %236, %238 : vector<8x128xf32>
    %240 = arith.mulf %239, %230 : vector<8x128xf32>
    %241 = arith.addf %225, %240 : vector<8x128xf32>
    %cst_19 = arith.constant 1.000000e+00 : f32
    %242 = vector.broadcast %cst_19 : f32 to vector<8x128xf32>
    %243 = arith.divf %242, %241 : vector<8x128xf32>
    %244 = arith.mulf %235, %243 : vector<8x128xf32>
    %245 = arith.addf %210, %244 : vector<8x128xf32>
    %246 = arith.mulf %225, %225 : vector<8x128xf32>
    %247 = arith.mulf %222, %231 : vector<8x128xf32>
    %cst_20 = arith.constant 2.000000e+00 : f32
    %248 = vector.broadcast %cst_20 : f32 to vector<8x128xf32>
    %249 = arith.mulf %248, %225 : vector<8x128xf32>
    %250 = arith.mulf %249, %230 : vector<8x128xf32>
    %251 = arith.addf %247, %250 : vector<8x128xf32>
    %252 = arith.mulf %218, %229 : vector<8x128xf32>
    %253 = arith.mulf %252, %229 : vector<8x128xf32>
    %254 = arith.addf %251, %253 : vector<8x128xf32>
    %255 = arith.mulf %246, %254 : vector<8x128xf32>
    %256 = arith.mulf %243, %243 : vector<8x128xf32>
    %257 = arith.mulf %255, %256 : vector<8x128xf32>
    %258 = math.log %257 : vector<8x128xf32>
    %259 = arith.select %5, %245, %0 : vector<8x128xi1>, vector<8x128xf32>
    %c0_21 = arith.constant 0 : index
    %c0_22 = arith.constant 0 : index
    %260 = vector.load %arg8[%c0_21, %c0_22] : memref<8x128xf32, #tpu.memory_space<vmem>>, vector<8x128xf32>
    tpu.vector_store %arg8[%c0_21, %c0_22], %259 {strides = array<i32>} : memref<8x128xf32, #tpu.memory_space<vmem>>, vector<8x128xf32>,
    %cst_23 = arith.constant 0.000000e+00 : f32
    %261 = vector.broadcast %cst_23 : f32 to vector<8x128xf32>
    %262 = arith.select %5, %258, %261 : vector<8x128xi1>, vector<8x128xf32>
    %c0_24 = arith.constant 0 : index
    %c0_25 = arith.constant 0 : index
    %263 = vector.load %arg9[%c0_24, %c0_25] : memref<8x128xf32, #tpu.memory_space<vmem>>, vector<8x128xf32>
    tpu.vector_store %arg9[%c0_24, %c0_25], %262 {strides = array<i32>} : memref<8x128xf32, #tpu.memory_space<vmem>>, vector<8x128xf32>,
    return
  }
  func.func @transform_0(%arg0: i32) -> (i32, i32) {
    %c0_i32 = arith.constant 0 : i32
    %c0_i32_0 = arith.constant 0 : i32
    return %arg0, %c0_i32 : i32, i32
  }
  func.func @transform_1(%arg0: i32) -> (i32, i32) {
    %c0_i32 = arith.constant 0 : i32
    %c0_i32_0 = arith.constant 0 : i32
    %c0_i32_1 = arith.constant 0 : i32
    return %c0_i32, %c0_i32_0 : i32, i32
  }
  func.func @transform_2(%arg0: i32) -> (i32, i32) {
    %c0_i32 = arith.constant 0 : i32
    %c0_i32_0 = arith.constant 0 : i32
    %c0_i32_1 = arith.constant 0 : i32
    return %c0_i32, %c0_i32_0 : i32, i32
  }
  func.func @transform_3(%arg0: i32) -> (i32, i32) {
    %c0_i32 = arith.constant 0 : i32
    %c0_i32_0 = arith.constant 0 : i32
    %c0_i32_1 = arith.constant 0 : i32
    return %c0_i32, %c0_i32_0 : i32, i32
  }
  func.func @transform_4(%arg0: i32) -> (i32, i32) {
    %c0_i32 = arith.constant 0 : i32
    %c0_i32_0 = arith.constant 0 : i32
    %c0_i32_1 = arith.constant 0 : i32
    return %c0_i32, %c0_i32_0 : i32, i32
  }
  func.func @transform_5(%arg0: i32) -> (i32, i32) {
    %c0_i32 = arith.constant 0 : i32
    %c0_i32_0 = arith.constant 0 : i32
    %c0_i32_1 = arith.constant 0 : i32
    return %c0_i32, %c0_i32_0 : i32, i32
  }
  func.func @transform_6(%arg0: i32) -> (i32, i32) {
    %c0_i32 = arith.constant 0 : i32
    %c0_i32_0 = arith.constant 0 : i32
    %c0_i32_1 = arith.constant 0 : i32
    return %c0_i32, %c0_i32_0 : i32, i32
  }
  func.func @transform_7(%arg0: i32) -> (i32, i32) {
    %c0_i32 = arith.constant 0 : i32
    %c0_i32_0 = arith.constant 0 : i32
    return %arg0, %c0_i32 : i32, i32
  }
  func.func @transform_8(%arg0: i32) -> (i32, i32) {
    %c0_i32 = arith.constant 0 : i32
    %c0_i32_0 = arith.constant 0 : i32
    return %arg0, %c0_i32 : i32, i32
  }
}

</mosaic_0001>

<bundles_post_ra>
// kernel: tpu_custom_call.1
= control target key start
LH: loop header
LB: loop body
LE: loop exit
PB: predicated region body
PF: predicated region fallthrough
CT: control target
= control target key end

     0   :  { %14 = vsyncpa [#allocation3], 0  ;;  %s859_s0 = inlined_call_operand.hbm [shape: f32[8,128], index: 0, kind: input, shape index: {}, may-alias: {0,7}]   ;;  %s860_s1 = inlined_call_operand.vmem [shape: f32[8,128], index: 1, kind: input, shape index: {}]   ;;  %s861_s2 = inlined_call_operand.vmem [shape: f32[8,128], index: 2, kind: input, shape index: {}]   ;;  %s862_s3 = inlined_call_operand.hbm [shape: f32[8,128], index: 3, kind: input, shape index: {}]   ;;  %s863_s4 = inlined_call_operand.hbm [shape: f32[8,128], index: 4, kind: input, shape index: {}]   ;;  %s864_s5 = inlined_call_operand.vmem [shape: f32[8,128], index: 5, kind: input, shape index: {}]   ;;  %s865_s6 = inlined_call_operand.hbm [shape: f32[8,128], index: 6, kind: input, shape index: {}]   ;;  %s866_s7 = inlined_call_operand.hbm [shape: f32[8,128], index: 7, kind: output, shape index: {0}, may-alias: {0,7}]   ;;  %s867_s8 = inlined_call_operand.hbm [shape: f32[8,128], index: 8, kind: output, shape index: {1}]  }
   0x1   :  { %15 = vsyncpa [#allocation6], 0 }
   0x2   :  { %16 = vsyncpa [#allocation9], 0 }
   0x3   :  { %17 = vsyncpa [#allocation4], 0 }
   0x4   :  { %18 = vsyncpa [#allocation12], 0  ;;  %s541_s27 = smov [#allocation5]   ;;  %s542_s29 = smov [#allocation2]  }
   0x5   :  { %s39_s28 = sshll.u32 %s541_s27, 4  ;;  %s25_s30 = sshll.u32 %s542_s29, 4  ;;  %s40_s28 = int_to_ptr.vmem [resolvable:$true] %s39_s28  ;;  %s26_s30 = int_to_ptr.vmem [resolvable:$true] %s25_s30 }
   0x6   :  { %s419_s9 = scalar_lea.vmem %s40_s28, 128  ;;  %p424_p1 = scmp.lt.s32.totalorder %s40_s28, %s40_s28 }
   0x7   :  { %p420_p0 = scmp.ne.s32.totalorder %s40_s28, %s419_s9  ;;  %p425_p2 = scmp.lt.s32.totalorder %s419_s9, %s419_s9 }
   0x9   :  { %p426_p3 = por %p425_p2, %p424_p1 }
   0xb   :  { %p427_p4 = pnand %p426_p3, %p420_p0 }
   0xd   :  { %430 = shalt.err (!%p427_p4)
}
   0xe   :  { %42 = dma.hbm_to_vmem [thread:$0]  %s862_s3, 128, %s40_s28, [#allocation6]  }
   0xf   :  { %s439_s12 = scalar_lea.vmem %s26_s30, 128  ;;  %p444_p6 = scmp.lt.s32.totalorder %s26_s30, %s26_s30 }
  0x10   :  { %p440_p5 = scmp.ne.s32.totalorder %s26_s30, %s439_s12  ;;  %p445_p7 = scmp.lt.s32.totalorder %s439_s12, %s439_s12 }
  0x12   :  { %p446_p8 = por %p445_p7, %p444_p6 }
  0x14   :  { %p447_p9 = pnand %p446_p8, %p440_p5 }
  0x16   :  { %450 = shalt.err (!%p447_p9)
}
  0x17   :  { %28 = dma.hbm_to_vmem [thread:$0]  %s859_s0, 128, %s26_s30, [#allocation3]  }
  0x18   :  { %s543_s15 = smov [#allocation7]   ;;  %s544_s17 = smov [#allocation8]  }
  0x19   :  { %s49_s16 = sshll.u32 %s543_s15, 4  ;;  %s61_s18 = sshll.u32 %s544_s17, 4  ;;  %s50_s16 = int_to_ptr.vmem [resolvable:$true] %s49_s16  ;;  %s62_s18 = int_to_ptr.vmem [resolvable:$true] %s61_s18 }
  0x1a   :  { %s459_s19 = scalar_lea.vmem %s50_s16, 128  ;;  %p464_p11 = scmp.lt.s32.totalorder %s50_s16, %s50_s16 }
  0x1b   :  { %p460_p10 = scmp.ne.s32.totalorder %s50_s16, %s459_s19  ;;  %p465_p12 = scmp.lt.s32.totalorder %s459_s19, %s459_s19 }
  0x1d   :  { %p466_p13 = por %p465_p12, %p464_p11 }
  0x1f   :  { %p467_p0 = pnand %p466_p13, %p460_p10 }
  0x21   :  { %470 = shalt.err (!%p467_p0)
}
  0x22   :  { %52 = dma.hbm_to_vmem [thread:$0]  %s863_s4, 128, %s50_s16, [#allocation6]  }
  0x23   :  { %s479_s21 = scalar_lea.vmem %s62_s18, 128  ;;  %p484_p2 = scmp.lt.s32.totalorder %s62_s18, %s62_s18 }
  0x24   :  { %p480_p1 = scmp.ne.s32.totalorder %s62_s18, %s479_s21  ;;  %p485_p3 = scmp.lt.s32.totalorder %s479_s21, %s479_s21 }
  0x26   :  { %p486_p4 = por %p485_p3, %p484_p2 }
  0x28   :  { %p487_p5 = pnand %p486_p4, %p480_p1 }
  0x2a   :  { %490 = shalt.err (!%p487_p5)
}
  0x2b   :  { %64 = dma.hbm_to_vmem [thread:$0]  %s865_s6, 128, %s62_s18, [#allocation9]  }
  0x2c   :  { %531 = dma.done.wait [#allocation3], 128  }
  0x2d   :  { %532 = vsyncadd [#allocation3], 4294967168 }
  0x2e   :  { %533 = dma.done.wait [#allocation6], 256  }
  0x2f   :  { %534 = vsyncadd [#allocation6], 4294967040 }
  0x30   :  { %535 = dma.done.wait [#allocation9], 128  }
  0x31   :  { %536 = vsyncadd [#allocation9], 4294967168  ;;  %v89_v0 = vlaneseq  ;;  %v608_v4 = vld [vmem:[#allocation2] sm:$0xff]  ;;  %v83_v5 = vld [vmem:[%s860_s1] sm:$0xff] }
  0x32   :  { %v616_v6 = vld [vmem:[%s861_s2] sm:$0xff]  ;;  %v619_v7 = vclamps-f32 %v608_v4, 3.0  ;;  %v648_v20 = vld [vmem:[#allocation7] sm:$0xff]  ;;  %vm78_vm7 = vcmp.ge.f32.partialorder %v608_v4, -3.0  ;;  %vm79_vm8 = vcmp.le.f32.partialorder %v608_v4, 3.0 }
  0x33   :  { %v90_v1 = vshrl.u32 %v89_v0, 7  ;;  %v655_v22 = vld [vmem:[%s864_s5] sm:$0xff]  ;;  %s545_s5 = smov [#allocation10]   ;;  %vm844_vm9 = vmand %vm78_vm7, %vm79_vm8 }
  0x34   :  { %v667_v27 = vld [vmem:[#allocation8] sm:$0xff]  ;;  %s373_s25 = sshll.u32 %s545_s5, 4  ;;  %s374_s25 = int_to_ptr.vmem [resolvable:$true] %s373_s25 }
  0x35   :  { %v604_v2 = vsub.s32 1, %v90_v1  ;;  %v606_v3 = vsub.s32 0, %v90_v1  ;;  %v622_v9 = vsub.s32 2, %v90_v1  ;;  %v633_v13 = vsub.s32 3, %v90_v1  ;;  %s491_s26 = scalar_lea.vmem %s374_s25, 128  ;;  %p496_p7 = scmp.lt.s32.totalorder %s374_s25, %s374_s25 }
  0x36   :  { %v646_v19 = vsub.s32 4, %v90_v1  ;;  %v664_v25 = vsub.s32 5, %v90_v1  ;;  %v688_v37 = vsub.s32 6, %v90_v1  ;;  %v713_v48 = vsub.s32 7, %v90_v1  ;;  %p492_p6 = scmp.ne.s32.totalorder %s374_s25, %s491_s26  ;;  %p497_p8 = scmp.lt.s32.totalorder %s491_s26, %s491_s26 }
  0x37   :  { %v92_v8 = vrot.slane %v83_v5, %v604_v2  ;;  %v102_v10 = vrot.slane %v616_v6, %v604_v2  ;;  %v106_v11 = vrot.slane %v616_v6, %v606_v3  ;;  %v147_v14 = vrot.slane %v83_v5, %v622_v9 }
  0x38   :  { %v153_v15 = vrot.slane %v616_v6, %v622_v9  ;;  %v178_v18 = vrot.slane %v83_v5, %v633_v13  ;;  %v184_v21 = vrot.slane %v616_v6, %v633_v13  ;;  %v97_v26 = vrot.slane %v83_v5, %v606_v3  ;;  %p498_p9 = por %p497_p8, %p496_p7 }
  0x39   :  { %vm629_vm0 = vcmp.ge.f32.partialorder %v619_v7, %v92_v8  ;;  %vm641_vm1 = vcmp.ge.f32.partialorder %v619_v7, %v147_v14  ;;  %v120_v28 = vrot.slane %v648_v20, %v604_v2  ;;  %v209_v29 = vrot.slane %v83_v5, %v646_v19 }
  0x3a   :  { %v107_v16 = vsel %vm629_vm0, %v102_v10, %v106_v11  ;;  %vm660_vm2 = vcmp.ge.f32.partialorder %v619_v7, %v178_v18  ;;  %v215_v30 = vrot.slane %v616_v6, %v646_v19  ;;  %v124_v31 = vrot.slane %v648_v20, %v606_v3  ;;  %p499_p10 = pnand %p498_p9, %p492_p6 }
  0x3b   :  { %v154_v23 = vsel %vm641_vm1, %v153_v15, %v107_v16  ;;  %v129_v32 = vrot.slane %v655_v22, %v604_v2  ;;  %v133_v33 = vrot.slane %v655_v22, %v606_v3  ;;  %vm683_vm3 = vcmp.ge.f32.partialorder %v619_v7, %v209_v29 }
  0x3c   :  { %v185_v34 = vsel %vm660_vm2, %v184_v21, %v154_v23  ;;  %v240_v36 = vrot.slane %v83_v5, %v664_v25  ;;  %v98_v38 = vsel %vm629_vm0, %v92_v8, %v97_v26  ;;  %v138_v39 = vrot.slane %v667_v27, %v604_v2 }
  0x3d   :  { %v142_v40 = vrot.slane %v667_v27, %v606_v3  ;;  %v163_v41 = vrot.slane %v648_v20, %v622_v9  ;;  %v168_v42 = vrot.slane %v655_v22, %v622_v9  ;;  %v216_v43 = vsel %vm683_vm3, %v215_v30, %v185_v34 }
  0x3e   :  { %vm703_vm4 = vcmp.ge.f32.partialorder %v619_v7, %v240_v36  ;;  %v246_v45 = vrot.slane %v616_v6, %v664_v25  ;;  %v125_v46 = vsel %vm629_vm0, %v120_v28, %v124_v31  ;;  %v134_v47 = vsel %vm629_vm0, %v129_v32, %v133_v33 }
  0x3f   :  { %v149_v49 = vsel %vm641_vm1, %v147_v14, %v98_v38  ;;  %v173_v50 = vrot.slane %v667_v27, %v622_v9  ;;  %v271_v51 = vrot.slane %v83_v5, %v688_v37  ;;  %v277_v52 = vrot.slane %v616_v6, %v688_v37 }
  0x40   :  { %v143_v53 = vsel %vm629_vm0, %v138_v39, %v142_v40  ;;  %v247_v54 = vsel %vm703_vm4, %v246_v45, %v216_v43  ;;  %v164_v55 = vsel %vm641_vm1, %v163_v41, %v125_v46  ;;  %v169_v56 = vsel %vm641_vm1, %v168_v42, %v134_v47 }
  0x41   :  { %vm731_vm5 = vcmp.ge.f32.partialorder %v619_v7, %v271_v51  ;;  %v180_v58 = vsel %vm660_vm2, %v178_v18, %v149_v49  ;;  %v194_v59 = vrot.slane %v648_v20, %v633_v13  ;;  %v199_v60 = vrot.slane %v655_v22, %v633_v13 }
  0x42   :  { %v204_v61 = vrot.slane %v667_v27, %v633_v13  ;;  %v174_v62 = vsel %vm641_vm1, %v173_v50, %v143_v53  ;;  %v278_v63 = vsel %vm731_vm5, %v277_v52, %v247_v54  ;;  %v302_v0 = vrot.slane %v83_v5, %v713_v48 }
  0x43   :  { %v308_v1 = vrot.slane %v616_v6, %v713_v48  ;;  %v225_v8 = vrot.slane %v648_v20, %v646_v19  ;;  %v211_v10 = vsel %vm683_vm3, %v209_v29, %v180_v58  ;;  %v230_v11 = vrot.slane %v655_v22, %v646_v19 }
  0x44   :  { %v235_v14 = vrot.slane %v667_v27, %v646_v19  ;;  %vm759_vm6 = vcmp.ge.f32.partialorder %v619_v7, %v302_v0  ;;  %v195_v5 = vsel %vm660_vm2, %v194_v59, %v164_v55  ;;  %v200_v6 = vsel %vm660_vm2, %v199_v60, %v169_v56 }
  0x45   :  { %v205_v16 = vsel %vm660_vm2, %v204_v61, %v174_v62  ;;  %v309_v18 = vsel %vm759_vm6, %v308_v1, %v278_v63  ;;  %v242_v21 = vsel %vm703_vm4, %v240_v36, %v211_v10  ;;  %v256_v23 = vrot.slane %v648_v20, %v664_v25 }
  0x46   :  { %405 = vrcp.f32 %v309_v18  ;;  %v261_v26 = vrot.slane %v655_v22, %v664_v25  ;;  %v266_v28 = vrot.slane %v667_v27, %v664_v25  ;;  %v226_v29 = vsel %vm683_vm3, %v225_v8, %v195_v5 }
  0x47   :  { %v231_v30 = vsel %vm683_vm3, %v230_v11, %v200_v6  ;;  %v236_v31 = vsel %vm683_vm3, %v235_v14, %v205_v16  ;;  %v273_v32 = vsel %vm731_vm5, %v271_v51, %v242_v21  ;;  %v287_v33 = vrot.slane %v648_v20, %v688_v37  ;;  %v85_v51 = vld [vmem:[#allocation5] sm:$0xff] }
  0x48   :  { %v292_v34 = vrot.slane %v655_v22, %v688_v37  ;;  %v297_v36 = vrot.slane %v667_v27, %v688_v37  ;;  %v257_v38 = vsel %vm703_vm4, %v256_v23, %v226_v29  ;;  %v262_v39 = vsel %vm703_vm4, %v261_v26, %v231_v30 }
  0x49   :  { %v267_v40 = vsel %vm703_vm4, %v266_v28, %v236_v31  ;;  %v304_v41 = vsel %vm759_vm6, %v302_v0, %v273_v32  ;;  %v318_v42 = vrot.slane %v648_v20, %v713_v48  ;;  %v323_v43 = vrot.slane %v655_v22, %v713_v48 }
  0x4a   :  { %v328_v45 = vrot.slane %v667_v27, %v713_v48  ;;  %v288_v46 = vsel %vm731_vm5, %v287_v33, %v257_v38  ;;  %v293_v47 = vsel %vm731_vm5, %v292_v34, %v262_v39  ;;  %v298_v49 = vsel %vm731_vm5, %v297_v36, %v267_v40 }
  0x4b   :  { %v333_v50 = vsub.f32 %v619_v7, %v304_v41  ;;  %v319_v20 = vsel %vm759_vm6, %v318_v42, %v288_v46  ;;  %v324_v22 = vsel %vm759_vm6, %v323_v43, %v293_v47  ;;  %v111_v56 = vrot.slane %v85_v51, %v604_v2 }
  0x4c   :  { %v329_v27 = vsel %vm759_vm6, %v328_v45, %v298_v49  ;;  %v115_v58 = vrot.slane %v85_v51, %v606_v3  ;;  %v158_v60 = vrot.slane %v85_v51, %v622_v9  ;;  %v189_v8 = vrot.slane %v85_v51, %v633_v13 }
  0x4d   :  { %v342_v55 = vadd.f32 %v329_v27, %v324_v22  ;;  %v220_v2 = vrot.slane %v85_v51, %v646_v19  ;;  %v251_v16 = vrot.slane %v85_v51, %v664_v25  ;;  %v282_v21 = vrot.slane %v85_v51, %v688_v37 }
  0x4e   :  { %v116_v63 = vsel %vm629_vm0, %v111_v56, %v115_v58  ;;  %v313_v24 = vrot.slane %v85_v51, %v713_v48 }
  0x4f   :  { %v159_v10 = vsel %vm641_vm1, %v158_v60, %v116_v63 }
  0x50   :  { %v190_v9 = vsel %vm660_vm2, %v189_v8, %v159_v10 }
  0x51   :  { %v221_v13 = vsel %vm683_vm3, %v220_v2, %v190_v9 }
  0x52   :  { %v252_v19 = vsel %vm703_vm4, %v251_v16, %v221_v13 }
  0x53   :  { %v406_v52 = vpop.eup %405  ;;  %v283_v29 = vsel %vm731_vm5, %v282_v21, %v252_v19 }
  0x54   :  { %v332_v53 = vmul.f32 %v406_v52, %v319_v20  ;;  %v334_v54 = vmul.f32 %v406_v52, %v333_v50  ;;  %v314_v37 = vsel %vm759_vm6, %v313_v24, %v283_v29 }
  0x56   :  { %v335_v59 = vsub.f32 1.0, %v334_v54  ;;  %v343_v7 = vmul.f32 2.0, %v332_v53  ;;  %v337_v0 = vmul.f32 %v334_v54, %v334_v54  ;;  %v351_v26 = vmul.f32 %v332_v53, %v332_v53 }
  0x58   :  { %v336_v61 = vmul.f32 %v335_v59, %v334_v54  ;;  %v344_v62 = vsub.f32 %v342_v55, %v343_v7  ;;  %v352_v3 = vmul.f32 %v337_v0, %v329_v27  ;;  %v355_v5 = vmul.f32 %v335_v59, %v324_v22 }
  0x59   :  { %v338_v6 = vmul.f32 %v337_v0, %v332_v53 }
  0x5a   :  { %v345_v1 = vmul.f32 %v344_v62, %v336_v61  ;;  %v353_v14 = vmul.f32 %v343_v7, %v336_v61  ;;  %v339_v12 = vmul.f32 %v336_v61, %v324_v22  ;;  %v356_v17 = vmul.f32 %v355_v5, %v335_v59 }
  0x5c   :  { %v346_v11 = vadd.f32 %v345_v1, %v332_v53  ;;  %v354_v18 = vadd.f32 %v353_v14, %v352_v3  ;;  %v340_v23 = vadd.f32 %v339_v12, %v338_v6 }
  0x5e   :  { %407 = vrcp.f32 %v346_v11  ;;  %v357_v28 = vadd.f32 %v356_v17, %v354_v18  ;;  %v341_v30 = vmul.f32 %v340_v23, %v319_v20 }
  0x60   :  { %v358_v25 = vmul.f32 %v357_v28, %v351_v26 }
  0x6b   :  { %v408_v35 = vpop.eup %407 }
  0x6c   :  { %v349_v31 = vmul.f32 %v408_v35, %v341_v30  ;;  %v359_v44 = vmul.f32 %v408_v35, %v408_v35 }
  0x6e   :  { %v350_v48 = vadd.f32 %v349_v31, %v314_v37  ;;  %v360_v57 = vmul.f32 %v359_v44, %v358_v25 }
  0x70   :  { %v363_v33 = vsel %vm844_vm9, %v350_v48, %v608_v4  ;;  %409 = vlog2.f32 %v360_v57 }
  0x71   :  { %364 = vst [vmem:[#allocation10] sm:$0xff] %v363_v33 }
  0x72   :  { %502 = shalt.err (!%p499_p10)
}
  0x73   :  { %376 = dma.vmem_to_hbm [thread:$0]  %s374_s25, 128, %s866_s7, [#allocation4]  }
  0x74   :  { %s546_s29 = smov [#allocation11]  }
  0x75   :  { %s383_s30 = sshll.u32 %s546_s29, 4  ;;  %s384_s30 = int_to_ptr.vmem [resolvable:$true] %s383_s30 }
  0x76   :  { %s511_s9 = scalar_lea.vmem %s384_s30, 128  ;;  %p516_p12 = scmp.lt.s32.totalorder %s384_s30, %s384_s30 }
  0x77   :  { %p512_p11 = scmp.ne.s32.totalorder %s384_s30, %s511_s9  ;;  %p517_p13 = scmp.lt.s32.totalorder %s511_s9, %s511_s9 }
  0x79   :  { %p518_p0 = por %p517_p13, %p516_p12 }
  0x7b   :  { %p519_p1 = pnand %p518_p0, %p512_p11 }
  0x7d   :  { %v410_v15 = vpop.eup %409 }
  0x7e   :  { %v362_v34 = vmul.f32 0.6931472, %v410_v15 }
  0x80   :  { %v365_v4 = vsel %vm844_vm9, %v362_v34, 0.0 }
  0x81   :  { %366 = vst [vmem:[#allocation11] sm:$0xff] %v365_v4 }
  0x82   :  { %522 = shalt.err (!%p519_p1)
}
  0x83   :  { %386 = dma.vmem_to_hbm [thread:$0]  %s384_s30, 128, %s867_s8, [#allocation12]  }
  0x84   :  { %537 = dma.done.wait [#allocation4], 128  }
  0x85   :  { %538 = vsyncadd [#allocation4], 4294967168 }
  0x86   :  { %539 = dma.done.wait [#allocation12], 128  }
  0x87   :  { %540 = vsyncadd [#allocation12], 4294967168 }
  0x88   :  { %393 = vsyncpa [#allocation3], 1 }
  0x89   :  { %394 = vsyncpa [#allocation6], 1 }
  0x8a   :  { %395 = vsyncpa [#allocation9], 1 }
  0x8b   :  { %396 = vsyncpa [#allocation4], 1 }
  0x8c   :  { %397 = vsyncpa [#allocation12], 1 }

</bundles_post_ra>
